<compile_context>
chip_gen: v5e
topology: v5e:2x2
jax: 0.10.0
libtpu: 0.0.40
codegen_flags: <defaults>
</compile_context>

<pallas_src>
import numpy as np
import jax
import jax.numpy as jnp
from jax.experimental import pallas as pl
from jax.experimental.pallas import tpu as pltpu


# ---------------------------------------------------------------------------
# Host-side, data-independent setup (mirrors FourierShellCorrelationLoss.make_shells)
# ---------------------------------------------------------------------------
def make_shells(shape, n_bins):
    """Elliptical annulus masks, returned as (n_bins, H, W) float32 in {0, 1}."""
    frame = np.amax(shape)
    max_r = (1.0 + np.amin(shape) / np.amax(shape)) / 2.0
    afocal, bfocal = shape[0] / 2, shape[1] / 2
    xx, yy = np.mgrid[: shape[0], : shape[1]]
    ellipse = ((xx - afocal) * 2 / frame) ** 2 + ((yy - bfocal) * 2 / frame) ** 2
    radii_sq = np.power(np.linspace(0.0, max_r, n_bins + 1)[1:], 2.0)
    ellipses = [(ellipse < r2) for r2 in radii_sq]
    shells = [ellipses[0]] + [
        np.logical_xor(e2, e1) for e1, e2 in zip(ellipses[:-1], ellipses[1:])
    ]
    return np.stack(shells).astype(np.float32)


def dft_matrix(n):
    """Real / imaginary parts of the (symmetric) n-point DFT matrix."""
    k = np.arange(n)
    ang = -2.0 * np.pi * np.outer(k, k) / n
    return np.cos(ang).astype(np.float32), np.sin(ang).astype(np.float32)


# ---------------------------------------------------------------------------
# Pallas kernel: per image -> |FFT2(z-target)|^2 and |FFT2(target)|^2 (lane-dense)
# ---------------------------------------------------------------------------
def _fsc_spectra_kernel(xs_ref, ch_ref, cw_ref, out_ref):
    # xs_ref : (1, 2, 2H, W)  [:, 0] real, [:, 1] imag; rows [0:H]=(z-target), [H:2H]=target
    # ch_ref : (3, H, H)  = [F_H_re, F_H_im, F_H_re + F_H_im]
    # cw_ref : (3, W, W)  = [F_W_re, F_W_re + F_W_im, F_W_im - F_W_re]
    # out_ref: (1, 2, H, W)  [:, 0] = |FFT2(z-target)|^2, [:, 1] = |FFT2(target)|^2
    hh = ch_ref.shape[1]

    xr = xs_ref[0, 0]                       # (2H, W)
    xi = xs_ref[0, 1]

    fwr, fw_rpi, fw_imr = cw_ref[0], cw_ref[1], cw_ref[2]
    fhr, fhi, fh_rpi = ch_ref[0], ch_ref[1], ch_ref[2]

    def dot(a, b):
        return jnp.dot(a, b, preferred_element_type=jnp.float32)

    # --- stage 1: column DFT  A = X @ F_W, both spectra fused (M = 2H), Karatsuba 3-matmul
    #   real(A) = Xr@Fr - Xi@Fi ;  imag(A) = Xr@Fi + Xi@Fr
    m1 = dot(xr + xi, fwr)                  # (Xr+Xi) @ Fr
    m2 = dot(xi, fw_rpi)                    # Xi @ (Fr+Fi)
    m3 = dot(xr, fw_imr)                    # Xr @ (Fi-Fr)
    ar = (m1 - m2).astype(xr.dtype)         # (2H, W)
    ai = (m1 + m3).astype(xr.dtype)

    # --- stage 2: row DFT  Y = F_H @ A per spectrum (Karatsuba), then power spectrum
    for idx in range(2):                    # 0 -> error spectrum, 1 -> norm_coeff spectrum
        a_r = ar[idx * hh:(idx + 1) * hh]   # (H, W), static sublane-aligned slice
        a_i = ai[idx * hh:(idx + 1) * hh]
        n1 = dot(fh_rpi, a_r)               # (Fr+Fi) @ Ar
        n2 = dot(fhi, a_r + a_i)            # Fi @ (Ar+Ai)
        n3 = dot(fhr, a_i - a_r)            # Fr @ (Ai-Ar)
        yr = n1 - n2
        yi = n1 + n3
        out_ref[0, idx] = (yr * yr + yi * yi).astype(out_ref.dtype)


# ---------------------------------------------------------------------------
# Wrapper
# ---------------------------------------------------------------------------
def fourier_shell_correlation_loss(z, target, n_bins, weights=None,
                                   compute_dtype=jnp.float32):
    """z, target: (B, H, W, 2) arrays of (real, imag) pairs. Returns scalar loss."""
    B, H, W, two = z.shape
    assert two == 2, "last dim must hold (real, imag)"

    # Host-side constants.
    fhr, fhi = dft_matrix(H)
    fwr, fwi = dft_matrix(W)
    ch = jnp.asarray(np.stack([fhr, fhi, fhr + fhi]), dtype=compute_dtype)        # (3,H,H)
    cw = jnp.asarray(np.stack([fwr, fwr + fwi, fwi - fwr]), dtype=compute_dtype)  # (3,W,W)
    masks = jnp.asarray(make_shells((H, W), n_bins))                              # (n_bins,H,W)

    # Pack (z - target, target) real/imag planes into one array: one DMA per grid step.
    diff = z - target                       # subtract in input precision before any cast
    xs = jnp.stack(
        [jnp.concatenate([diff[..., 0], target[..., 0]], axis=1),
         jnp.concatenate([diff[..., 1], target[..., 1]], axis=1)],
        axis=1).astype(compute_dtype)       # (B, 2, 2H, W)

    itemsize = int(np.dtype(compute_dtype).itemsize)
    cost = pl.CostEstimate(
        flops=int(12 * B * H * W * (H + W)),
        transcendentals=0,
        bytes_accessed=int(itemsize * (B * 2 * 2 * H * W + 3 * H * H + 3 * W * W)
                           + 4 * B * 2 * H * W),
    )

    spectra = pl.pallas_call(
        _fsc_spectra_kernel,
        out_shape=jax.ShapeDtypeStruct((B, 2, H, W), jnp.float32),
        grid_spec=pltpu.PrefetchScalarGridSpec(
            num_scalar_prefetch=0,
            grid=(B,),
            in_specs=[
                pl.BlockSpec((1, 2, 2 * H, W), lambda b: (b, 0, 0, 0)),  # packed image
                pl.BlockSpec((3, H, H), lambda b: (0, 0, 0)),            # F_H combos
                pl.BlockSpec((3, W, W), lambda b: (0, 0, 0)),            # F_W combos
            ],
            out_specs=pl.BlockSpec((1, 2, H, W), lambda b: (b, 0, 0, 0)),
        ),
        compiler_params=pltpu.CompilerParams(
            dimension_semantics=("parallel",),        # shard batch across TensorCores
            vmem_limit_bytes=48 * 1024 * 1024,        # explicit, with v7x (64 MiB) headroom
        ),
        cost_estimate=cost,
    )(xs, ch, cw)

    # Shell reduction as one lane-dense MXU matmul (XLA); masks never touch kernel VMEM.
    spec_flat = spectra.reshape(B * 2, H * W)
    masks_flat = masks.reshape(n_bins, H * W)
    sums = jnp.einsum("bp,np->bn", spec_flat, masks_flat,
                      precision=jax.lax.Precision.HIGHEST).reshape(B, 2, n_bins)
    err_s, nc_s = sums[:, 0, :], sums[:, 1, :]            # (B, n_bins)
    ratio = err_s / jnp.maximum(nc_s, 1e-12)              # torch.clamp(min=1e-12)
    per_shell = jnp.sum(ratio, axis=0)                    # (n_bins,) == per_shell_loss
    if weights is None:
        loss = jnp.sum(per_shell)
    else:
        loss = jnp.sum(per_shell * jnp.asarray(weights, dtype=per_shell.dtype))
    return loss / (n_bins * B)


# ---------------------------------------------------------------------------
# Pure-JAX reference mirroring the PyTorch module exactly (uses jnp.fft.fft2)
# ---------------------------------------------------------------------------
def fourier_shell_correlation_loss_ref(z, target, n_bins, weights=None):
    B, H, W, _ = z.shape
    shells = jnp.asarray(make_shells((H, W), n_bins))
    zc = z[..., 0] + 1j * z[..., 1]
    tc = target[..., 0] + 1j * target[..., 1]
    nc = jnp.abs(jnp.fft.fft2(tc)) ** 2
    err = jnp.abs(jnp.fft.fft2(zc - tc)) ** 2
    err_s = jnp.einsum("shw,bhw->sb", shells, err)
    nc_s = jnp.einsum("shw,bhw->sb", shells, nc)
    ratio = err_s / jnp.maximum(nc_s, 1e-12)
    per_shell = jnp.sum(ratio, axis=1)
    if weights is None:
        loss = jnp.sum(per_shell)
    else:
        loss = jnp.sum(per_shell * jnp.asarray(weights, dtype=per_shell.dtype))
    return loss / (n_bins * B)


if __name__ == "__main__":
    key = jax.random.PRNGKey(0)
    kz, kt = jax.random.split(key)

    # Small smoke-test shape, same layout as the module: (B, H, W, 2).
    B, H, W, n_bins = 4, 16, 16, 6
    z = jax.random.normal(kz, (B, H, W, 2), dtype=jnp.float32)
    target = jax.random.normal(kt, (B, H, W, 2), dtype=jnp.float32)

    loss = jax.block_until_ready(fourier_shell_correlation_loss(z, target, n_bins))
    ref = fourier_shell_correlation_loss_ref(z, target, n_bins)
    assert loss.shape == ()
    assert bool(jnp.isfinite(loss))
    # tolerance leaves headroom for the default reduced-precision MXU passes of f32 matmuls
    assert jnp.allclose(loss, ref, rtol=2e-2, atol=1e-6), (loss, ref)

    weights = jnp.linspace(0.5, 1.5, n_bins, dtype=jnp.float32)
    loss_w = jax.block_until_ready(
        fourier_shell_correlation_loss(z, target, n_bins, weights=weights))
    ref_w = fourier_shell_correlation_loss_ref(z, target, n_bins, weights=weights)
    assert jnp.allclose(loss_w, ref_w, rtol=2e-2, atol=1e-6), (loss_w, ref_w)

    # Lane-dense path (W = 128) with bf16 DFT operands (f32 accumulation); loose tolerance.
    B2, H2, W2, n_bins2 = 2, 16, 128, 8
    z2 = jax.random.normal(jax.random.PRNGKey(1), (B2, H2, W2, 2), dtype=jnp.float32)
    t2 = jax.random.normal(jax.random.PRNGKey(2), (B2, H2, W2, 2), dtype=jnp.float32)
    loss2 = jax.block_until_ready(
        fourier_shell_correlation_loss(z2, t2, n_bins2, compute_dtype=jnp.bfloat16))
    ref2 = fourier_shell_correlation_loss_ref(z2, t2, n_bins2)
    assert bool(jnp.isfinite(loss2))
    assert jnp.allclose(loss2, ref2, rtol=1e-1, atol=1e-6), (loss2, ref2)

    print("KERNEL_OK")
</pallas_src>

<mosaic_0001>
module attributes {stable_mosaic.version = 11 : i64} {
  func.func @_fsc_spectra_kernel(%arg0: i32, %arg1: memref<1x2x32x16xf32, #tpu.memory_space<vmem>>, %arg2: memref<3x16x16xf32, #tpu.memory_space<vmem>>, %arg3: memref<3x16x16xf32, #tpu.memory_space<vmem>>, %arg4: memref<1x2x16x16xf32, #tpu.memory_space<vmem>>) attributes {dimension_semantics = [#tpu.dimension_semantics<parallel>], iteration_bounds = array<i64: 4>, scalar_prefetch = 0 : i64, scratch_operands = 0 : i64, tpu.core_type = #tpu.core_type<tc>, window_params = [{transform_indices = @transform_0, window_bounds = array<i64: 1, 2, 32, 16>}, {pipeline_mode = #tpu.pipeline_mode<synchronous>, transform_indices = @transform_1, window_bounds = array<i64: 3, 16, 16>}, {pipeline_mode = #tpu.pipeline_mode<synchronous>, transform_indices = @transform_2, window_bounds = array<i64: 3, 16, 16>}, {transform_indices = @transform_3, window_bounds = array<i64: 1, 2, 16, 16>}]} {
    %c0 = arith.constant 0 : index
    %c0_0 = arith.constant 0 : index
    %c0_1 = arith.constant 0 : index
    %c0_2 = arith.constant 0 : index
    %0 = vector.load %arg1[%c0, %c0_0, %c0_1, %c0_2] : memref<1x2x32x16xf32, #tpu.memory_space<vmem>>, vector<1x1x32x16xf32>
    %1 = vector.shape_cast %0 : vector<1x1x32x16xf32> to vector<32x16xf32>
    %c0_3 = arith.constant 0 : index
    %c1 = arith.constant 1 : index
    %c0_4 = arith.constant 0 : index
    %c0_5 = arith.constant 0 : index
    %2 = vector.load %arg1[%c0_3, %c1, %c0_4, %c0_5] : memref<1x2x32x16xf32, #tpu.memory_space<vmem>>, vector<1x1x32x16xf32>
    %3 = vector.shape_cast %2 : vector<1x1x32x16xf32> to vector<32x16xf32>
    %c0_6 = arith.constant 0 : index
    %c0_7 = arith.constant 0 : index
    %c0_8 = arith.constant 0 : index
    %4 = vector.load %arg3[%c0_6, %c0_7, %c0_8] : memref<3x16x16xf32, #tpu.memory_space<vmem>>, vector<1x16x16xf32>
    %5 = vector.shape_cast %4 : vector<1x16x16xf32> to vector<16x16xf32>
    %c1_9 = arith.constant 1 : index
    %c0_10 = arith.constant 0 : index
    %c0_11 = arith.constant 0 : index
    %6 = vector.load %arg3[%c1_9, %c0_10, %c0_11] : memref<3x16x16xf32, #tpu.memory_space<vmem>>, vector<1x16x16xf32>
    %7 = vector.shape_cast %6 : vector<1x16x16xf32> to vector<16x16xf32>
    %c2 = arith.constant 2 : index
    %c0_12 = arith.constant 0 : index
    %c0_13 = arith.constant 0 : index
    %8 = vector.load %arg3[%c2, %c0_12, %c0_13] : memref<3x16x16xf32, #tpu.memory_space<vmem>>, vector<1x16x16xf32>
    %9 = vector.shape_cast %8 : vector<1x16x16xf32> to vector<16x16xf32>
    %c0_14 = arith.constant 0 : index
    %c0_15 = arith.constant 0 : index
    %c0_16 = arith.constant 0 : index
    %10 = vector.load %arg2[%c0_14, %c0_15, %c0_16] : memref<3x16x16xf32, #tpu.memory_space<vmem>>, vector<1x16x16xf32>
    %11 = vector.shape_cast %10 : vector<1x16x16xf32> to vector<16x16xf32>
    %c1_17 = arith.constant 1 : index
    %c0_18 = arith.constant 0 : index
    %c0_19 = arith.constant 0 : index
    %12 = vector.load %arg2[%c1_17, %c0_18, %c0_19] : memref<3x16x16xf32, #tpu.memory_space<vmem>>, vector<1x16x16xf32>
    %13 = vector.shape_cast %12 : vector<1x16x16xf32> to vector<16x16xf32>
    %c2_20 = arith.constant 2 : index
    %c0_21 = arith.constant 0 : index
    %c0_22 = arith.constant 0 : index
    %14 = vector.load %arg2[%c2_20, %c0_21, %c0_22] : memref<3x16x16xf32, #tpu.memory_space<vmem>>, vector<1x16x16xf32>
    %15 = vector.shape_cast %14 : vector<1x16x16xf32> to vector<16x16xf32>
    %16 = arith.addf %1, %3 : vector<32x16xf32>
    %cst = arith.constant dense<0.000000e+00> : vector<32x16xf32>
    %17 = tpu.matmul %16, %5, %cst {dimension_numbers = #tpu.dot_dimension_numbers<[1], [0], [0], [1], [0, 0, 1, 1], [], []>} : vector<32x16xf32>, vector<16x16xf32>, vector<32x16xf32> -> vector<32x16xf32>
    %cst_23 = arith.constant dense<0.000000e+00> : vector<32x16xf32>
    %18 = tpu.matmul %3, %7, %cst_23 {dimension_numbers = #tpu.dot_dimension_numbers<[1], [0], [0], [1], [0, 0, 1, 1], [], []>} : vector<32x16xf32>, vector<16x16xf32>, vector<32x16xf32> -> vector<32x16xf32>
    %cst_24 = arith.constant dense<0.000000e+00> : vector<32x16xf32>
    %19 = tpu.matmul %1, %9, %cst_24 {dimension_numbers = #tpu.dot_dimension_numbers<[1], [0], [0], [1], [0, 0, 1, 1], [], []>} : vector<32x16xf32>, vector<16x16xf32>, vector<32x16xf32> -> vector<32x16xf32>
    %20 = arith.subf %17, %18 : vector<32x16xf32>
    %21 = arith.addf %17, %19 : vector<32x16xf32>
    %22 = vector.extract_strided_slice %20 {offsets = [0, 0], sizes = [16, 16], strides = [1, 1]} : vector<32x16xf32> to vector<16x16xf32>
    %23 = vector.extract_strided_slice %21 {offsets = [0, 0], sizes = [16, 16], strides = [1, 1]} : vector<32x16xf32> to vector<16x16xf32>
    %cst_25 = arith.constant dense<0.000000e+00> : vector<16x16xf32>
    %24 = tpu.matmul %15, %22, %cst_25 {dimension_numbers = #tpu.dot_dimension_numbers<[1], [0], [0], [1], [0, 0, 1, 1], [], []>} : vector<16x16xf32>, vector<16x16xf32>, vector<16x16xf32> -> vector<16x16xf32>
    %25 = arith.addf %22, %23 : vector<16x16xf32>
    %cst_26 = arith.constant dense<0.000000e+00> : vector<16x16xf32>
    %26 = tpu.matmul %13, %25, %cst_26 {dimension_numbers = #tpu.dot_dimension_numbers<[1], [0], [0], [1], [0, 0, 1, 1], [], []>} : vector<16x16xf32>, vector<16x16xf32>, vector<16x16xf32> -> vector<16x16xf32>
    %27 = arith.subf %23, %22 : vector<16x16xf32>
    %cst_27 = arith.constant dense<0.000000e+00> : vector<16x16xf32>
    %28 = tpu.matmul %11, %27, %cst_27 {dimension_numbers = #tpu.dot_dimension_numbers<[1], [0], [0], [1], [0, 0, 1, 1], [], []>} : vector<16x16xf32>, vector<16x16xf32>, vector<16x16xf32> -> vector<16x16xf32>
    %29 = arith.subf %24, %26 : vector<16x16xf32>
    %30 = arith.addf %24, %28 : vector<16x16xf32>
    %31 = arith.mulf %29, %29 : vector<16x16xf32>
    %32 = arith.mulf %30, %30 : vector<16x16xf32>
    %33 = arith.addf %31, %32 : vector<16x16xf32>
    %c0_28 = arith.constant 0 : index
    %c0_29 = arith.constant 0 : index
    %c0_30 = arith.constant 0 : index
    %c0_31 = arith.constant 0 : index
    %34 = vector.load %arg4[%c0_28, %c0_29, %c0_30, %c0_31] : memref<1x2x16x16xf32, #tpu.memory_space<vmem>>, vector<1x1x16x16xf32>
    %35 = vector.shape_cast %34 : vector<1x1x16x16xf32> to vector<16x16xf32>
    %36 = vector.shape_cast %33 : vector<16x16xf32> to vector<1x1x16x16xf32>
    tpu.vector_store %arg4[%c0_28, %c0_29, %c0_30, %c0_31], %36 {strides = array<i32>} : memref<1x2x16x16xf32, #tpu.memory_space<vmem>>, vector<1x1x16x16xf32>,
    %37 = vector.extract_strided_slice %20 {offsets = [16, 0], sizes = [16, 16], strides = [1, 1]} : vector<32x16xf32> to vector<16x16xf32>
    %38 = vector.extract_strided_slice %21 {offsets = [16, 0], sizes = [16, 16], strides = [1, 1]} : vector<32x16xf32> to vector<16x16xf32>
    %cst_32 = arith.constant dense<0.000000e+00> : vector<16x16xf32>
    %39 = tpu.matmul %15, %37, %cst_32 {dimension_numbers = #tpu.dot_dimension_numbers<[1], [0], [0], [1], [0, 0, 1, 1], [], []>} : vector<16x16xf32>, vector<16x16xf32>, vector<16x16xf32> -> vector<16x16xf32>
    %40 = arith.addf %37, %38 : vector<16x16xf32>
    %cst_33 = arith.constant dense<0.000000e+00> : vector<16x16xf32>
    %41 = tpu.matmul %13, %40, %cst_33 {dimension_numbers = #tpu.dot_dimension_numbers<[1], [0], [0], [1], [0, 0, 1, 1], [], []>} : vector<16x16xf32>, vector<16x16xf32>, vector<16x16xf32> -> vector<16x16xf32>
    %42 = arith.subf %38, %37 : vector<16x16xf32>
    %cst_34 = arith.constant dense<0.000000e+00> : vector<16x16xf32>
    %43 = tpu.matmul %11, %42, %cst_34 {dimension_numbers = #tpu.dot_dimension_numbers<[1], [0], [0], [1], [0, 0, 1, 1], [], []>} : vector<16x16xf32>, vector<16x16xf32>, vector<16x16xf32> -> vector<16x16xf32>
    %44 = arith.subf %39, %41 : vector<16x16xf32>
    %45 = arith.addf %39, %43 : vector<16x16xf32>
    %46 = arith.mulf %44, %44 : vector<16x16xf32>
    %47 = arith.mulf %45, %45 : vector<16x16xf32>
    %48 = arith.addf %46, %47 : vector<16x16xf32>
    %c0_35 = arith.constant 0 : index
    %c1_36 = arith.constant 1 : index
    %c0_37 = arith.constant 0 : index
    %c0_38 = arith.constant 0 : index
    %49 = vector.load %arg4[%c0_35, %c1_36, %c0_37, %c0_38] : memref<1x2x16x16xf32, #tpu.memory_space<vmem>>, vector<1x1x16x16xf32>
    %50 = vector.shape_cast %49 : vector<1x1x16x16xf32> to vector<16x16xf32>
    %51 = vector.shape_cast %48 : vector<16x16xf32> to vector<1x1x16x16xf32>
    tpu.vector_store %arg4[%c0_35, %c1_36, %c0_37, %c0_38], %51 {strides = array<i32>} : memref<1x2x16x16xf32, #tpu.memory_space<vmem>>, vector<1x1x16x16xf32>,
    return
  }
  func.func @transform_0(%arg0: i32) -> (i32, i32, i32, i32) {
    %c0_i32 = arith.constant 0 : i32
    %c0_i32_0 = arith.constant 0 : i32
    %c0_i32_1 = arith.constant 0 : i32
    %c0_i32_2 = arith.constant 0 : i32
    return %arg0, %c0_i32, %c0_i32_0, %c0_i32_1 : i32, i32, i32, i32
  }
  func.func @transform_1(%arg0: i32) -> (i32, i32, i32) {
    %c0_i32 = arith.constant 0 : i32
    %c0_i32_0 = arith.constant 0 : i32
    %c0_i32_1 = arith.constant 0 : i32
    %c0_i32_2 = arith.constant 0 : i32
    return %c0_i32, %c0_i32_0, %c0_i32_1 : i32, i32, i32
  }
  func.func @transform_2(%arg0: i32) -> (i32, i32, i32) {
    %c0_i32 = arith.constant 0 : i32
    %c0_i32_0 = arith.constant 0 : i32
    %c0_i32_1 = arith.constant 0 : i32
    %c0_i32_2 = arith.constant 0 : i32
    return %c0_i32, %c0_i32_0, %c0_i32_1 : i32, i32, i32
  }
  func.func @transform_3(%arg0: i32) -> (i32, i32, i32, i32) {
    %c0_i32 = arith.constant 0 : i32
    %c0_i32_0 = arith.constant 0 : i32
    %c0_i32_1 = arith.constant 0 : i32
    %c0_i32_2 = arith.constant 0 : i32
    return %arg0, %c0_i32, %c0_i32_0, %c0_i32_1 : i32, i32, i32, i32
  }
}

</mosaic_0001>

<bundles_post_ra>
// kernel: tpu_custom_call.1
= control target key start
LH: loop header
LB: loop body
LE: loop exit
PB: predicated region body
PF: predicated region fallthrough
CT: control target
= control target key end

     0   :  { %8 = vsyncpa [#allocation3], 0  ;;  %s936_s0 = inlined_call_operand.vmem [shape: f32[4,2,32,16], index: 0, kind: input, shape index: {}]   ;;  %s937_s1 = inlined_call_operand.vmem [shape: f32[3,16,16], index: 1, kind: input, shape index: {}]   ;;  %s938_s2 = inlined_call_operand.vmem [shape: f32[3,16,16], index: 2, kind: input, shape index: {}]   ;;  %s939_s3 = inlined_call_operand.hbm [shape: f32[4,2,16,16], index: 3, kind: output, shape index: {}]  }
   0x1   :  { %10 = vsyncpa [#allocation3 + $0x1], 0  ;;  %s776_s12 = smov 0   ;;  %s778_s13 = smov 0  }
   0x2   :  { %s780_s14 = smov 0   ;;  %s782_s15 = smov 0  }
   0x3 LB: > { %s797_s16 = sadd.s32 4294967295, %s752_s15   ;;  %s597_s17 = sadd.s32 4294967294, %s752_s15   ;;  %s752_s15 = sphi %s782_s15, %s945_s15   ;;  %s748_s14 = sphi %s780_s14, %s944_s14   ;;  %s744_s13 = sphi %s778_s13, %s943_s13   ;;  %s740_s12 = sphi %s776_s12, %s942_s12  }
   0x4   : > { %s801_s18 = sadd.s32 1, %s752_s15   ;;  %s91_s19 = sadd.s32 1, %s748_s14 }
   0x5   : > { %s88_s20 = ssub.s32 %s752_s15, %s801_s18  ;;  %p101_p0 = scmp.ne.s32.totalorder %s748_s14, %s744_s13 }
   0x6   : > { %p89_p1 = scmp.eq.s32.totalorder %s88_s20, 0  ;;  %p102_p2 = scmp.eq.s32.totalorder %s797_s16, 3 }
   0x7   : > { %p107_p3 = scmp.ne.s32.totalorder %s744_s13, %s740_s12  ;;  %p108_p4 = scmp.eq.s32.totalorder %s597_s17, 3 }
   0x8   : > { %s812_s21 = scalar_select %p89_p1, %s748_s14, %s91_s19  }
   0x9   : > { %p814_p5 = por %p102_p2, %p101_p0  ;;  %p818_p6 = por %p108_p4, %p107_p3 }
   0xa   : > { %p600_p7 = scmp.ge.s32.totalorder %s752_s15, 1  ;;  %p140_p8 = scmp.lt.s32.totalorder %s752_s15, 5 }
   0xc   : > { %p141_p9 = pnand %p600_p7, %p140_p8 }
   0xd   : > { %p164_p10 = scmp.lt.s32.totalorder (!%p141_p9), %s797_s16, 3  ;;  %s161_s8 = sand.u32 (!%p141_p9), 1, %s744_s13  }
   0xe   : > { %144 = sbr.rel (%p141_p9) target bundleno = 348 (0x15c), region = 32  ;;  %s648_s11 = sshll.u32 (!%p141_p9), %s797_s16, 5 }
   0xf   : > { %s531_s20 = scalar_lea.hbm (!%p141_p9), %s939_s3, %s648_s11  ;;  %s710_s30 = scalar_lea.hbm (!%p141_p9), %s939_s3, 128 }
  0x10   : > { %s534_s25 = sshll.u32 (!%p141_p9), %s531_s20, 4  ;;  %s535_s25 = int_to_ptr.hbm [resolvable:$true] %s534_s25 }
  0x11   : > { %s704_s26 = sshra.s32 (!%p141_p9), %s535_s25, 4  ;;  %s705_s26 = int_to_ptr.hbm [resolvable:$true] %s704_s26 }
  0x12   : > { %s706_s27 = scalar_lea.hbm (!%p141_p9), %s705_s26, 32  ;;  %p711_p0 = scmp.lt.s32.totalorder (!%p141_p9), %s705_s26, %s939_s3 }
  0x13   : > { %v611_v0 = vld [vmem:[%s938_s2 + $0x28] sm:$0xff]  ;;  %v609_v2 = vld [vmem:[%s938_s2 + $0x18] sm:$0xff]  ;;  %v610_v3 = vld [vmem:[%s938_s2 + $0x20] sm:$0xff]  ;;  %s165_s9 = scalar_select %p164_p10, %s797_s16, 3  ;;  %vm198_vm0 = vcmask 130048  }
  0x14   : > { %v179_v1 = vld [vmem:[%s938_s2 + $0x8] sm:$0xff]  ;;  %307 = vmatpush.msra.mxu2 %v611_v0  ;;  %v178_v4 = vld [vmem:[%s938_s2] sm:$0xff]  ;;  %v608_v5 = vld [vmem:[%s938_s2 + $0x10] sm:$0xff]  ;;  %266 = vmatpush.msra.mxu1 %v609_v2  ;;  %s520_s16 = scalar_lea.sflag [#allocation3], %s161_s8  ;;  %p707_p11 = scmp.ne.s32.totalorder %s705_s26, %s706_s27 }
  0x15   : > { %225 = vmatpush.msra.mxu0 %v179_v1  ;;  %s647_s10 = sshll.u32 %s165_s9, 6  ;;  %v614_v25 = vld [vmem:[%s937_s1 + $0x20] sm:$0xff]  ;;  %v615_v36 = vld [vmem:[%s937_s1 + $0x28] sm:$0xff]  ;;  %v612_v44 = vld [vmem:[%s937_s1 + $0x10] sm:$0xff]  ;;  %s601_s9 = sshll.u32 %s161_s8, 5 }
  0x16   : > { %308 = vmatpush.msra.mxu2 %v610_v3  ;;  %267 = vmatpush.msra.mxu1 %v608_v5  ;;  %s168_s19 = scalar_lea.vmem %s936_s0, %s647_s10  ;;  %v186_v35 = vld [vmem:[%s937_s1] sm:$0xff]  ;;  %v187_v42 = vld [vmem:[%s937_s1 + $0x8] sm:$0xff]  ;;  %v613_v51 = vld [vmem:[%s937_s1 + $0x18] sm:$0xff]  ;;  %s892_s10 = scalar_lea.vmem [#allocation2], %s601_s9 }
  0x17   : > { %226 = vmatpush.msra.mxu0 %v178_v4  ;;  %v169_v6 = vld [vmem:[%s168_s19] sm:$0xff]  ;;  %v170_v9 = vld [vmem:[%s168_s19 + $0x8] sm:$0xff]  ;;  %v606_v12 = vld [vmem:[%s168_s19 + $0x30] sm:$0xff]  ;;  %s532_s24 = sshll.u32 %s892_s10, 4  ;;  %p708_p12 = pnand %p707_p11, %p814_p5  ;;  %s533_s24 = int_to_ptr.vmem [resolvable:$true] %s532_s24 }
  0x18   : > { %v604_v7 = vld [vmem:[%s168_s19 + $0x20] sm:$0xff]  ;;  %624 = vmatmul.msk.f32.vlgmr.msra.gmra.mxu2 %vm198_vm0, %v169_v6  ;;  %v605_v10 = vld [vmem:[%s168_s19 + $0x28] sm:$0xff]  ;;  %v171_v13 = vld [vmem:[%s168_s19 + $0x10] sm:$0xff]  ;;  %p712_p1 = scmp.lt.s32.totalorder %s710_s30, %s706_s27 }
  0x19   : > { %v194_v8 = vadd.f32 %v604_v7, %v169_v6  ;;  %620 = vmatmul.msk.f32.vlgmr.msra.gmra.mxu1 %vm198_vm0, %v604_v7  ;;  %v195_v11 = vadd.f32 %v605_v10, %v170_v9  ;;  %v196_v14 = vadd.f32 %v606_v12, %v171_v13  ;;  %v607_v15 = vld [vmem:[%s168_s19 + $0x38] sm:$0xff]  ;;  %p709_p13 = pneg %p708_p12 }
  0x1a   : > { %v172_v16 = vld [vmem:[%s168_s19 + $0x18] sm:$0xff]  ;;  %p713_p2 = por %p712_p1, %p711_p0 }
  0x1b   : > { %616 = vmatmul.msk.f32.vlgmr.msra.gmra.mxu0 %vm198_vm0, %v194_v8  ;;  %v197_v17 = vadd.f32 %v607_v15, %v172_v16 }
  0x1c   : > { %p714_p3 = pnand %p713_p2, %p709_p13 }
  0x20   : > { %625 = vmatmul.msk.f32.gmra.mxu2 %vm198_vm0, %v170_v9 }
  0x21   : > { %621 = vmatmul.msk.f32.gmra.mxu1 %vm198_vm0, %v605_v10 }
  0x23   : > { %617 = vmatmul.msk.f32.gmra.mxu0 %vm198_vm0, %v195_v11 }
  0x28   : > { %626 = vmatmul.msk.f32.gmra.mxu2 %vm198_vm0, %v171_v13 }
  0x29   : > { %622 = vmatmul.msk.f32.gmra.mxu1 %vm198_vm0, %v606_v12 }
  0x2b   : > { %618 = vmatmul.msk.f32.gmra.mxu0 %vm198_vm0, %v196_v14 }
  0x30   : > { %627 = vmatmul.msk.f32.gmra.mxu2 %vm198_vm0, %v172_v16 }
  0x31   : > { %623 = vmatmul.msk.f32.gmra.mxu1 %vm198_vm0, %v607_v15 }
  0x33   : > { %619 = vmatmul.msk.f32.gmra.mxu0 %vm198_vm0, %v197_v17 }
  0x96   : > { %v269_v18 = vpop.f32.mrf.mxu1 }
  0x98   : > { %v228_v19 = vpop.f32.mrf.mxu0 }
  0x99   : > { %v322_v24 = vsub.f32 %v228_v19, %v269_v18 }
  0x9b   : > { %v310_v20 = vpop.f32.mrf.mxu2 }
  0x9c   : > { %v326_v27 = vadd.f32 %v310_v20, %v228_v19 }
  0x9e   : > { %v272_v21 = vpop.f32.mrf.mxu1  ;;  %v359_v33 = vadd.f32 %v326_v27, %v322_v24  ;;  %v390_v34 = vsub.f32 %v326_v27, %v322_v24 }
  0xa0   : > { %v231_v22 = vpop.f32.mrf.mxu0 }
  0xa1   : > { %v323_v23 = vsub.f32 %v231_v22, %v272_v21 }
  0xa3   : > { %350 = vmatpush.msra.mxu3 %v323_v23  ;;  %v313_v26 = vpop.f32.mrf.mxu2 }
  0xa4   : > { %v327_v28 = vadd.f32 %v313_v26, %v231_v22 }
  0xa5   : > { %351 = vmatpush.msra.mxu3 %v322_v24 }
  0xa6   : > { %v275_v29 = vpop.f32.mrf.mxu1  ;;  %628 = vmatmul.msk.f32.vlgmr.msra.gmra.mxu3 %vm198_vm0, %v614_v25  ;;  %v360_v30 = vadd.f32 %v327_v28, %v323_v23  ;;  %v391_v31 = vsub.f32 %v327_v28, %v323_v23 }
  0xa8   : > { %v234_v32 = vpop.f32.mrf.mxu0  ;;  %381 = vmatpush.msrb.mxu3 %v360_v30  ;;  %412 = vmatpush.msrb.mxu0 %v391_v31 }
  0xa9   : > { %v324_v40 = vsub.f32 %v234_v32, %v275_v29 }
  0xaa   : > { %382 = vmatpush.msrb.mxu3 %v359_v33  ;;  %413 = vmatpush.msrb.mxu0 %v390_v34 }
  0xab   : > { %v316_v37 = vpop.f32.mrf.mxu2  ;;  %632 = vmatmul.msk.f32.vlgmr.msrb.gmra.mxu0 %vm198_vm0, %v186_v35 }
  0xac   : > { %v328_v43 = vadd.f32 %v316_v37, %v234_v32 }
  0xae   : > { %v278_v38 = vpop.f32.mrf.mxu1  ;;  %629 = vmatmul.msk.f32.gmra.mxu3 %vm198_vm0, %v615_v36  ;;  %v481_v47 = vsub.f32 %v328_v43, %v324_v40  ;;  %v456_v50 = vadd.f32 %v328_v43, %v324_v40 }
  0xb0   : > { %v237_v39 = vpop.f32.mrf.mxu0 }
  0xb1   : > { %v325_v41 = vsub.f32 %v237_v39, %v278_v38 }
  0xb3   : > { %447 = vmatpush.msrb.mxu1 %v325_v41  ;;  %v319_v45 = vpop.f32.mrf.mxu2  ;;  %633 = vmatmul.msk.f32.gmra.mxu0 %vm198_vm0, %v187_v42 }
  0xb4   : > { %v329_v46 = vadd.f32 %v319_v45, %v237_v39 }
  0xb5   : > { %448 = vmatpush.msrb.mxu1 %v324_v40 }
  0xb6   : > { %630 = vmatmul.msk.f32.vlgmr.msrb.gmra.mxu3 %vm198_vm0, %v612_v44  ;;  %634 = vmatmul.msk.f32.vlgmr.msrb.gmra.mxu1 %vm198_vm0, %v614_v25  ;;  %v482_v48 = vsub.f32 %v329_v46, %v325_v41  ;;  %v457_v49 = vadd.f32 %v329_v46, %v325_v41 }
  0xb8   : > { %472 = vmatpush.msrb.mxu2 %v457_v49  ;;  %497 = vmatpush.msra.mxu3 %v482_v48 }
  0xba   : > { %473 = vmatpush.msrb.mxu2 %v456_v50  ;;  %498 = vmatpush.msra.mxu3 %v481_v47 }
  0xbb   : > { %636 = vmatmul.msk.f32.vlgmr.msrb.gmra.mxu2 %vm198_vm0, %v612_v44 }
  0xbe   : > { %631 = vmatmul.msk.f32.gmra.mxu3 %vm198_vm0, %v613_v51  ;;  %635 = vmatmul.msk.f32.gmra.mxu1 %vm198_vm0, %v615_v36 }
  0xc3   : > { %637 = vmatmul.msk.f32.gmra.mxu2 %vm198_vm0, %v613_v51 }
  0xc6   : > { %638 = vmatmul.msk.f32.vlgmr.msra.gmra.mxu3 %vm198_vm0, %v186_v35 }
  0xce   : > { %639 = vmatmul.msk.f32.gmra.mxu3 %vm198_vm0, %v187_v42 }
 0x128   : > { %v415_v54 = vpop.f32.mrf.mxu0 }
 0x129   : > { %v353_v52 = vpop.f32.mrf.mxu3 }
 0x12a   : > { %v423_v55 = vadd.f32 %v415_v54, %v353_v52 }
 0x12c   : > { %v427_v59 = vmul.f32 %v423_v55, %v423_v55 }
 0x130   : > { %v418_v60 = vpop.f32.mrf.mxu0 }
 0x131   : > { %v356_v53 = vpop.f32.mrf.mxu3 }
 0x132   : > { %v424_v62 = vadd.f32 %v418_v60, %v356_v53 }
 0x133   : > { %v450_v63 = vpop.f32.mrf.mxu1 }
 0x134   : > { %v428_v4 = vmul.f32 %v424_v62, %v424_v62 }
 0x139   : > { %v384_v56 = vpop.f32.mrf.mxu3 }
 0x13a   : > { %v421_v57 = vsub.f32 %v353_v52, %v384_v56 }
 0x13b   : > { %v453_v10 = vpop.f32.mrf.mxu1 }
 0x13c   : > { %v425_v58 = vmul.f32 %v421_v57, %v421_v57 }
 0x13e   : > { %v429_v61 = vadd.f32 %v427_v59, %v425_v58  ;;  %v475_v1 = vpop.f32.mrf.mxu2 }
 0x13f   : > { %v506_v6 = vsub.f32 %v450_v63, %v475_v1 }
 0x140   : > { %431 = vst.msk [vmem:[%s892_s10] sm:$0xff] %vm198_vm0, %v429_v61 }
 0x141   : > { %v387_v0 = vpop.f32.mrf.mxu3  ;;  %v510_v8 = vmul.f32 %v506_v6, %v506_v6 }
 0x142   : > { %v422_v2 = vsub.f32 %v356_v53, %v387_v0 }
 0x144   : > { %v426_v3 = vmul.f32 %v422_v2, %v422_v2 }
 0x146   : > { %v430_v5 = vadd.f32 %v428_v4, %v426_v3  ;;  %v478_v11 = vpop.f32.mrf.mxu2 }
 0x147   : > { %v507_v14 = vsub.f32 %v453_v10, %v478_v11 }
 0x148   : > { %432 = vst.msk [vmem:[%s892_s10 + $0x8] sm:$0xff] %vm198_vm0, %v430_v5 }
 0x149   : > { %v500_v7 = vpop.f32.mrf.mxu3  ;;  %v511_v16 = vmul.f32 %v507_v14, %v507_v14 }
 0x14a   : > { %v508_v9 = vadd.f32 %v500_v7, %v450_v63 }
 0x14c   : > { %v512_v12 = vmul.f32 %v508_v9, %v508_v9 }
 0x14e   : > { %v514_v13 = vadd.f32 %v512_v12, %v510_v8 }
 0x150   : > { %640 = vst.msk [vmem:[%s892_s10 + $0x10] sm:$0xff] %vm198_vm0, %v514_v13 }
 0x151   : > { %v503_v15 = vpop.f32.mrf.mxu3 }
 0x152   : > { %v509_v17 = vadd.f32 %v503_v15, %v453_v10 }
 0x154   : > { %v513_v18 = vmul.f32 %v509_v17, %v509_v17 }
 0x156   : > { %v515_v19 = vadd.f32 %v513_v18, %v511_v16 }
 0x158   : > { %641 = vst.msk [vmem:[%s892_s10 + $0x18] sm:$0xff] %vm198_vm0, %v515_v19 }
 0x159   : > { %717 = shalt.err (!%p714_p3)
}
 0x15a   : > { %s754_s6 = smov 128   ;;  %s755_s7 = smov 8  }
 0x15b   : > { %649 = dma.vmem_to_hbm [thread:$0]  (%p814_p5), %s533_s24, 512, %s535_s25, %s520_s16, %s754_s6, %s754_s6, %s755_s7  }
 0x15c PF: > { %p655_p4 = scmp.ge.s32.totalorder %s752_s15, 2  ;;  %s549_s8 = sand.u32 1, %s740_s12  }
 0x15d   : > { %s550_s9 = scalar_lea.sflag [#allocation3], %s549_s8 }
 0x15e   : > { %p652_p7 = pnand %p655_p4, %p818_p6 }
 0x160   : > { %p653_p8 = pneg %p652_p7 }
 0x162   : > { %735 = dma.done.wait (%p653_p8), %s550_s9, 512  }
 0x163   : > { %737 = vsyncadd (%p653_p8), %s550_s9, 4294966784  ;;  %p13_p9 = scmp.ge.s32.totalorder %s801_s18, 6   ;;  %s942_s12 = smov %s744_s13 }
 0x164   : > { %s943_s13 = smov %s748_s14  ;;  %s944_s14 = smov %s812_s21 }
 0x165   : > { %s945_s15 = smov %s801_s18  ;;  %15 = sbr.rel (!%p13_p9) target bundleno = 3 (0x3), region = 73 }
 0x16a   :  { %556 = vsyncpa [#allocation3], 1 }
 0x16b   :  { %558 = vsyncpa [#allocation3 + $0x1], 1 }

</bundles_post_ra>
